<compile_context>
chip_gen: v7x
topology: tpu7x:2x2x1
jax: 0.10.0
libtpu: 0.0.40
codegen_flags: <defaults>
</compile_context>

<pallas_src>
import functools

import jax
import jax.numpy as jnp
from jax.experimental import pallas as pl
from jax.experimental.pallas import tpu as pltpu

EPS = 1e-5
LANE = 128


def _round_up(n, m):
    return ((n + m - 1) // m) * m


def _vmem():
    return pl.BlockSpec(memory_space=pltpu.MemorySpace.VMEM)


def _pad2(x, rows, cols):
    r, c = x.shape
    return jnp.pad(x, ((0, rows - r), (0, cols - c)))


# ----------------------------------------------------------------------------
# Fused Pallas kernel: whole forward pass in one call, all data VMEM-resident.
# ----------------------------------------------------------------------------
def _batchnorm(h, gamma, beta):
    # Training-mode BatchNorm1d: per-feature mean / biased variance over rows.
    mean = jnp.mean(h, axis=0, keepdims=True)
    var = jnp.mean((h - mean) * (h - mean), axis=0, keepdims=True)
    return (h - mean) * jax.lax.rsqrt(var + EPS) * gamma + beta


def fused_gcn_kernel(a_ref, p_ref, x_ref, *refs, n_conv, n_hidden):
    out_ref = refs[-1]
    refs = refs[:-1]

    a = a_ref[...]          # [N, N] normalized adjacency, resident for all convs
    h = x_ref[...]          # [N, F_pad]
    idx = 0

    # conv blocks: BatchNorm1d( relu( A_norm @ (h @ W) + b ) )
    for _ in range(n_conv):
        w = refs[idx][...]
        b = refs[idx + 1][...]
        g = refs[idx + 2][...]
        be = refs[idx + 3][...]
        idx += 4
        xw = jnp.dot(h, w, preferred_element_type=jnp.float32)
        h = jnp.maximum(jnp.dot(a, xw, preferred_element_type=jnp.float32) + b, 0.0)
        h = _batchnorm(h, g, be)

    # global_add_pool: pooled[g] = sum_{batch[n]==g} h[n]  ==  P @ h
    h = jnp.dot(p_ref[...], h, preferred_element_type=jnp.float32)

    # hidden blocks: BatchNorm1d( relu( h @ W + b ) )
    for _ in range(n_hidden):
        w = refs[idx][...]
        b = refs[idx + 1][...]
        g = refs[idx + 2][...]
        be = refs[idx + 3][...]
        idx += 4
        h = jnp.maximum(jnp.dot(h, w, preferred_element_type=jnp.float32) + b, 0.0)
        h = _batchnorm(h, g, be)

    # final Linear (no relu); output columns are lane-padded to 128 (zeros
    # beyond column 0), the wrapper slices column 0.
    w_out = refs[idx][...]
    b_out = refs[idx + 1][...]
    out_ref[...] = jnp.dot(h, w_out, preferred_element_type=jnp.float32) + b_out


# ----------------------------------------------------------------------------
# Wrapper: pad all feature dims to lane width, flatten params, one pallas_call.
# ----------------------------------------------------------------------------
def gcn_forward(x, a_norm, pool_mat, params):
    n_conv = len(params["conv"])
    n_hidden = len(params["hidden"])
    n_nodes, f_in = x.shape
    n_graphs = pool_mat.shape[0]

    f_in_p = _round_up(f_in, LANE)
    conv_dim_p = _round_up(params["conv"][0][0].shape[1], LANE)
    hidden_dim_p = (_round_up(params["hidden"][0][0].shape[1], LANE)
                    if n_hidden else conv_dim_p)
    out_p = LANE  # pad the width-1 final output to a full lane group

    x_p = _pad2(x, n_nodes, f_in_p)

    flat = []
    fin_p = f_in_p
    for (w, b), (g, be) in zip(params["conv"], params["bn_conv"]):
        flat += [_pad2(w, fin_p, conv_dim_p), _pad2(b, 1, conv_dim_p),
                 _pad2(g, 1, conv_dim_p), _pad2(be, 1, conv_dim_p)]
        fin_p = conv_dim_p
    for (w, b), (g, be) in zip(params["hidden"], params["bn_hidden"]):
        flat += [_pad2(w, fin_p, hidden_dim_p), _pad2(b, 1, hidden_dim_p),
                 _pad2(g, 1, hidden_dim_p), _pad2(be, 1, hidden_dim_p)]
        fin_p = hidden_dim_p
    w_out, b_out = params["out"]
    flat += [_pad2(w_out, fin_p, out_p), _pad2(b_out, 1, out_p)]

    kernel = functools.partial(fused_gcn_kernel, n_conv=n_conv, n_hidden=n_hidden)
    out_padded = pl.pallas_call(
        kernel,
        out_shape=jax.ShapeDtypeStruct((n_graphs, out_p), jnp.float32),
        in_specs=[_vmem()] * (3 + len(flat)),
        out_specs=_vmem(),
    )(a_norm, pool_mat, x_p, *flat)

    out = out_padded[:, :1]
    return out, out  # heatmaps=False -> (x, x)


# ----------------------------------------------------------------------------
# Graph preprocessing glue (dense normalized adjacency, pooling matrix)
# ----------------------------------------------------------------------------
def build_norm_adj(edge_index, num_nodes):
    src, dst = edge_index[0], edge_index[1]
    a = jnp.zeros((num_nodes, num_nodes), jnp.float32)
    # scatter-ADD so duplicate parallel edges accumulate (PyG semantics);
    # message j -> i lands in row i, column j.
    a = a.at[dst, src].add(1.0)
    a_hat = a + jnp.eye(num_nodes, dtype=jnp.float32)  # add self-loops
    deg = jnp.sum(a_hat, axis=1)                       # in-degree (+ self-loop)
    d_inv_sqrt = jax.lax.rsqrt(deg)
    return d_inv_sqrt[:, None] * a_hat * d_inv_sqrt[None, :]


def build_pool_matrix(batch, num_graphs):
    return (batch[None, :] == jnp.arange(num_graphs)[:, None]).astype(jnp.float32)


# ----------------------------------------------------------------------------
# Parameter init (deterministic, synthetic)
# ----------------------------------------------------------------------------
def init_params(key, in_features, n_convolutions, convolutions_dim,
                n_hidden_layers, hidden_layers_dim):
    params = {"conv": [], "bn_conv": [], "hidden": [], "bn_hidden": []}

    def glorot(k, fan_in, fan_out):
        scale = jnp.sqrt(6.0 / (fan_in + fan_out))
        return jax.random.uniform(k, (fan_in, fan_out), jnp.float32, -scale, scale)

    for i in range(n_convolutions):
        fin = in_features if i == 0 else convolutions_dim
        key, kw = jax.random.split(key)
        w = glorot(kw, fin, convolutions_dim)
        b = jnp.zeros((1, convolutions_dim), jnp.float32)
        params["conv"].append((w, b))
        params["bn_conv"].append(
            (jnp.ones((1, convolutions_dim), jnp.float32),
             jnp.zeros((1, convolutions_dim), jnp.float32)))

    for i in range(n_hidden_layers):
        fin = convolutions_dim if i == 0 else hidden_layers_dim
        key, kw, kb = jax.random.split(key, 3)
        w = glorot(kw, fin, hidden_layers_dim)
        bound = 1.0 / jnp.sqrt(jnp.float32(fin))
        b = jax.random.uniform(kb, (1, hidden_layers_dim), jnp.float32, -bound, bound)
        params["hidden"].append((w, b))
        params["bn_hidden"].append(
            (jnp.ones((1, hidden_layers_dim), jnp.float32),
             jnp.zeros((1, hidden_layers_dim), jnp.float32)))

    key, kw, kb = jax.random.split(key, 3)
    w_out = glorot(kw, hidden_layers_dim, 1)
    bound = 1.0 / jnp.sqrt(jnp.float32(hidden_layers_dim))
    b_out = jax.random.uniform(kb, (1, 1), jnp.float32, -bound, bound)
    params["out"] = (w_out, b_out)
    return params


# ----------------------------------------------------------------------------
# Jitted end-to-end forward (glue + fused Pallas kernel)
# ----------------------------------------------------------------------------
@functools.partial(jax.jit, static_argnames=("num_nodes", "num_graphs"))
def run_forward(x, edge_index, batch, params, *, num_nodes, num_graphs):
    a_norm = build_norm_adj(edge_index, num_nodes)
    pool_mat = build_pool_matrix(batch, num_graphs)
    return gcn_forward(x, a_norm, pool_mat, params)


if __name__ == "__main__":
    # small synthetic graph batch
    NUM_NODES = 32
    NUM_GRAPHS = 4
    NUM_EDGES = 64
    IN_FEATURES = 16
    N_CONVOLUTIONS = 2
    CONV_DIM = 32
    N_HIDDEN = 2
    HIDDEN_DIM = 32

    key = jax.random.PRNGKey(0)
    kx, ke, kp = jax.random.split(key, 3)

    x = jax.random.normal(kx, (NUM_NODES, IN_FEATURES), jnp.float32)

    # random undirected edge_index [2, E]
    e = jax.random.randint(ke, (2, NUM_EDGES), 0, NUM_NODES)
    edge_index = jnp.concatenate([e, e[::-1]], axis=1)

    # nodes evenly assigned to graphs: batch[n] = n // (N / G)
    batch = jnp.arange(NUM_NODES) // (NUM_NODES // NUM_GRAPHS)

    params = init_params(kp, IN_FEATURES, N_CONVOLUTIONS, CONV_DIM,
                         N_HIDDEN, HIDDEN_DIM)

    out, cam = run_forward(x, edge_index, batch, params,
                           num_nodes=NUM_NODES, num_graphs=NUM_GRAPHS)
    out = jax.block_until_ready(out)
    assert out.shape == (NUM_GRAPHS, 1)
    assert cam.shape == (NUM_GRAPHS, 1)
    assert bool(jnp.all(jnp.isfinite(out)))
    print("KERNEL_OK")
</pallas_src>

<mosaic_0001>
module attributes {stable_mosaic.version = 11 : i64} {
  func.func private @main(%arg0: i32) attributes {dimension_semantics = [#tpu.dimension_semantics<core_parallel>], iteration_bounds = array<i64: 2>, tpu.core_type = #tpu.core_type<sc_scalar_subcore>, window_params = []} {
    return
  }
}

module attributes {stable_mosaic.version = 11 : i64} {
  func.func private @main(%arg0: i32) attributes {dimension_semantics = [#tpu.dimension_semantics<core_parallel>], iteration_bounds = array<i64: 2>, tpu.core_type = #tpu.core_type<sc_scalar_subcore>, window_params = []} {
    return
  }
}

module attributes {stable_mosaic.version = 11 : i64} {
  func.func @fused_gcn_kernel(%arg0: memref<32x32xf32, #tpu.memory_space<vmem>>, %arg1: memref<4x32xf32, #tpu.memory_space<vmem>>, %arg2: memref<32x128xf32, #tpu.memory_space<vmem>>, %arg3: memref<128x128xf32, #tpu.memory_space<vmem>>, %arg4: memref<1x128xf32, #tpu.memory_space<vmem>>, %arg5: memref<1x128xf32, #tpu.memory_space<vmem>>, %arg6: memref<1x128xf32, #tpu.memory_space<vmem>>, %arg7: memref<128x128xf32, #tpu.memory_space<vmem>>, %arg8: memref<1x128xf32, #tpu.memory_space<vmem>>, %arg9: memref<1x128xf32, #tpu.memory_space<vmem>>, %arg10: memref<1x128xf32, #tpu.memory_space<vmem>>, %arg11: memref<128x128xf32, #tpu.memory_space<vmem>>, %arg12: memref<1x128xf32, #tpu.memory_space<vmem>>, %arg13: memref<1x128xf32, #tpu.memory_space<vmem>>, %arg14: memref<1x128xf32, #tpu.memory_space<vmem>>, %arg15: memref<128x128xf32, #tpu.memory_space<vmem>>, %arg16: memref<1x128xf32, #tpu.memory_space<vmem>>, %arg17: memref<1x128xf32, #tpu.memory_space<vmem>>, %arg18: memref<1x128xf32, #tpu.memory_space<vmem>>, %arg19: memref<128x128xf32, #tpu.memory_space<vmem>>, %arg20: memref<1x128xf32, #tpu.memory_space<vmem>>, %arg21: memref<4x128xf32, #tpu.memory_space<vmem>>) attributes {dimension_semantics = [], scalar_prefetch = 0 : i64, scratch_operands = 0 : i64, tpu.core_type = #tpu.core_type<tc>} {
    %c0 = arith.constant 0 : index
    %c0_0 = arith.constant 0 : index
    %0 = vector.load %arg0[%c0, %c0_0] : memref<32x32xf32, #tpu.memory_space<vmem>>, vector<32x32xf32>
    %c0_1 = arith.constant 0 : index
    %c0_2 = arith.constant 0 : index
    %1 = vector.load %arg2[%c0_1, %c0_2] : memref<32x128xf32, #tpu.memory_space<vmem>>, vector<32x128xf32>
    %c0_3 = arith.constant 0 : index
    %c0_4 = arith.constant 0 : index
    %2 = vector.load %arg3[%c0_3, %c0_4] : memref<128x128xf32, #tpu.memory_space<vmem>>, vector<128x128xf32>
    %c0_5 = arith.constant 0 : index
    %c0_6 = arith.constant 0 : index
    %3 = vector.load %arg4[%c0_5, %c0_6] : memref<1x128xf32, #tpu.memory_space<vmem>>, vector<1x128xf32>
    %c0_7 = arith.constant 0 : index
    %c0_8 = arith.constant 0 : index
    %4 = vector.load %arg5[%c0_7, %c0_8] : memref<1x128xf32, #tpu.memory_space<vmem>>, vector<1x128xf32>
    %c0_9 = arith.constant 0 : index
    %c0_10 = arith.constant 0 : index
    %5 = vector.load %arg6[%c0_9, %c0_10] : memref<1x128xf32, #tpu.memory_space<vmem>>, vector<1x128xf32>
    %cst = arith.constant dense<0.000000e+00> : vector<32x128xf32>
    %6 = tpu.matmul %1, %2, %cst {dimension_numbers = #tpu.dot_dimension_numbers<[1], [0], [0], [1], [0, 0, 1, 1], [], []>} : vector<32x128xf32>, vector<128x128xf32>, vector<32x128xf32> -> vector<32x128xf32>
    %cst_11 = arith.constant dense<0.000000e+00> : vector<32x128xf32>
    %7 = tpu.matmul %0, %6, %cst_11 {dimension_numbers = #tpu.dot_dimension_numbers<[1], [0], [0], [1], [0, 0, 1, 1], [], []>} : vector<32x32xf32>, vector<32x128xf32>, vector<32x128xf32> -> vector<32x128xf32>
    %8 = vector.broadcast %3 : vector<1x128xf32> to vector<32x128xf32>
    %9 = arith.addf %7, %8 : vector<32x128xf32>
    %cst_12 = arith.constant 0.000000e+00 : f32
    %10 = vector.broadcast %cst_12 : f32 to vector<32x128xf32>
    %11 = arith.maximumf %9, %10 : vector<32x128xf32>
    %cst_13 = arith.constant dense<0.000000e+00> : vector<128xf32>
    %12 = vector.multi_reduction <add>, %11, %cst_13 [0] : vector<32x128xf32> to vector<128xf32>
    %13 = vector.shape_cast %12 : vector<128xf32> to vector<1x128xf32>
    %cst_14 = arith.constant 3.200000e+01 : f32
    %14 = vector.broadcast %cst_14 : f32 to vector<1x128xf32>
    %15 = arith.divf %13, %14 : vector<1x128xf32>
    %16 = vector.broadcast %15 : vector<1x128xf32> to vector<32x128xf32>
    %17 = arith.subf %11, %16 : vector<32x128xf32>
    %18 = vector.broadcast %15 : vector<1x128xf32> to vector<32x128xf32>
    %19 = arith.subf %11, %18 : vector<32x128xf32>
    %20 = arith.mulf %17, %19 : vector<32x128xf32>
    %cst_15 = arith.constant dense<0.000000e+00> : vector<128xf32>
    %21 = vector.multi_reduction <add>, %20, %cst_15 [0] : vector<32x128xf32> to vector<128xf32>
    %22 = vector.shape_cast %21 : vector<128xf32> to vector<1x128xf32>
    %cst_16 = arith.constant 3.200000e+01 : f32
    %23 = vector.broadcast %cst_16 : f32 to vector<1x128xf32>
    %24 = arith.divf %22, %23 : vector<1x128xf32>
    %25 = vector.broadcast %15 : vector<1x128xf32> to vector<32x128xf32>
    %26 = arith.subf %11, %25 : vector<32x128xf32>
    %cst_17 = arith.constant 9.99999974E-6 : f32
    %27 = vector.broadcast %cst_17 : f32 to vector<1x128xf32>
    %28 = arith.addf %24, %27 : vector<1x128xf32>
    %29 = math.rsqrt %28 : vector<1x128xf32>
    %30 = vector.broadcast %29 : vector<1x128xf32> to vector<32x128xf32>
    %31 = arith.mulf %26, %30 : vector<32x128xf32>
    %32 = vector.broadcast %4 : vector<1x128xf32> to vector<32x128xf32>
    %33 = arith.mulf %31, %32 : vector<32x128xf32>
    %34 = vector.broadcast %5 : vector<1x128xf32> to vector<32x128xf32>
    %35 = arith.addf %33, %34 : vector<32x128xf32>
    %c0_18 = arith.constant 0 : index
    %c0_19 = arith.constant 0 : index
    %36 = vector.load %arg7[%c0_18, %c0_19] : memref<128x128xf32, #tpu.memory_space<vmem>>, vector<128x128xf32>
    %c0_20 = arith.constant 0 : index
    %c0_21 = arith.constant 0 : index
    %37 = vector.load %arg8[%c0_20, %c0_21] : memref<1x128xf32, #tpu.memory_space<vmem>>, vector<1x128xf32>
    %c0_22 = arith.constant 0 : index
    %c0_23 = arith.constant 0 : index
    %38 = vector.load %arg9[%c0_22, %c0_23] : memref<1x128xf32, #tpu.memory_space<vmem>>, vector<1x128xf32>
    %c0_24 = arith.constant 0 : index
    %c0_25 = arith.constant 0 : index
    %39 = vector.load %arg10[%c0_24, %c0_25] : memref<1x128xf32, #tpu.memory_space<vmem>>, vector<1x128xf32>
    %cst_26 = arith.constant dense<0.000000e+00> : vector<32x128xf32>
    %40 = tpu.matmul %35, %36, %cst_26 {dimension_numbers = #tpu.dot_dimension_numbers<[1], [0], [0], [1], [0, 0, 1, 1], [], []>} : vector<32x128xf32>, vector<128x128xf32>, vector<32x128xf32> -> vector<32x128xf32>
    %cst_27 = arith.constant dense<0.000000e+00> : vector<32x128xf32>
    %41 = tpu.matmul %0, %40, %cst_27 {dimension_numbers = #tpu.dot_dimension_numbers<[1], [0], [0], [1], [0, 0, 1, 1], [], []>} : vector<32x32xf32>, vector<32x128xf32>, vector<32x128xf32> -> vector<32x128xf32>
    %42 = vector.broadcast %37 : vector<1x128xf32> to vector<32x128xf32>
    %43 = arith.addf %41, %42 : vector<32x128xf32>
    %cst_28 = arith.constant 0.000000e+00 : f32
    %44 = vector.broadcast %cst_28 : f32 to vector<32x128xf32>
    %45 = arith.maximumf %43, %44 : vector<32x128xf32>
    %cst_29 = arith.constant dense<0.000000e+00> : vector<128xf32>
    %46 = vector.multi_reduction <add>, %45, %cst_29 [0] : vector<32x128xf32> to vector<128xf32>
    %47 = vector.shape_cast %46 : vector<128xf32> to vector<1x128xf32>
    %cst_30 = arith.constant 3.200000e+01 : f32
    %48 = vector.broadcast %cst_30 : f32 to vector<1x128xf32>
    %49 = arith.divf %47, %48 : vector<1x128xf32>
    %50 = vector.broadcast %49 : vector<1x128xf32> to vector<32x128xf32>
    %51 = arith.subf %45, %50 : vector<32x128xf32>
    %52 = vector.broadcast %49 : vector<1x128xf32> to vector<32x128xf32>
    %53 = arith.subf %45, %52 : vector<32x128xf32>
    %54 = arith.mulf %51, %53 : vector<32x128xf32>
    %cst_31 = arith.constant dense<0.000000e+00> : vector<128xf32>
    %55 = vector.multi_reduction <add>, %54, %cst_31 [0] : vector<32x128xf32> to vector<128xf32>
    %56 = vector.shape_cast %55 : vector<128xf32> to vector<1x128xf32>
    %cst_32 = arith.constant 3.200000e+01 : f32
    %57 = vector.broadcast %cst_32 : f32 to vector<1x128xf32>
    %58 = arith.divf %56, %57 : vector<1x128xf32>
    %59 = vector.broadcast %49 : vector<1x128xf32> to vector<32x128xf32>
    %60 = arith.subf %45, %59 : vector<32x128xf32>
    %cst_33 = arith.constant 9.99999974E-6 : f32
    %61 = vector.broadcast %cst_33 : f32 to vector<1x128xf32>
    %62 = arith.addf %58, %61 : vector<1x128xf32>
    %63 = math.rsqrt %62 : vector<1x128xf32>
    %64 = vector.broadcast %63 : vector<1x128xf32> to vector<32x128xf32>
    %65 = arith.mulf %60, %64 : vector<32x128xf32>
    %66 = vector.broadcast %38 : vector<1x128xf32> to vector<32x128xf32>
    %67 = arith.mulf %65, %66 : vector<32x128xf32>
    %68 = vector.broadcast %39 : vector<1x128xf32> to vector<32x128xf32>
    %69 = arith.addf %67, %68 : vector<32x128xf32>
    %c0_34 = arith.constant 0 : index
    %c0_35 = arith.constant 0 : index
    %70 = vector.load %arg1[%c0_34, %c0_35] : memref<4x32xf32, #tpu.memory_space<vmem>>, vector<4x32xf32>
    %cst_36 = arith.constant dense<0.000000e+00> : vector<4x128xf32>
    %71 = tpu.matmul %70, %69, %cst_36 {dimension_numbers = #tpu.dot_dimension_numbers<[1], [0], [0], [1], [0, 0, 1, 1], [], []>} : vector<4x32xf32>, vector<32x128xf32>, vector<4x128xf32> -> vector<4x128xf32>
    %c0_37 = arith.constant 0 : index
    %c0_38 = arith.constant 0 : index
    %72 = vector.load %arg11[%c0_37, %c0_38] : memref<128x128xf32, #tpu.memory_space<vmem>>, vector<128x128xf32>
    %c0_39 = arith.constant 0 : index
    %c0_40 = arith.constant 0 : index
    %73 = vector.load %arg12[%c0_39, %c0_40] : memref<1x128xf32, #tpu.memory_space<vmem>>, vector<1x128xf32>
    %c0_41 = arith.constant 0 : index
    %c0_42 = arith.constant 0 : index
    %74 = vector.load %arg13[%c0_41, %c0_42] : memref<1x128xf32, #tpu.memory_space<vmem>>, vector<1x128xf32>
    %c0_43 = arith.constant 0 : index
    %c0_44 = arith.constant 0 : index
    %75 = vector.load %arg14[%c0_43, %c0_44] : memref<1x128xf32, #tpu.memory_space<vmem>>, vector<1x128xf32>
    %cst_45 = arith.constant dense<0.000000e+00> : vector<4x128xf32>
    %76 = tpu.matmul %71, %72, %cst_45 {dimension_numbers = #tpu.dot_dimension_numbers<[1], [0], [0], [1], [0, 0, 1, 1], [], []>} : vector<4x128xf32>, vector<128x128xf32>, vector<4x128xf32> -> vector<4x128xf32>
    %77 = vector.broadcast %73 : vector<1x128xf32> to vector<4x128xf32>
    %78 = arith.addf %76, %77 : vector<4x128xf32>
    %cst_46 = arith.constant 0.000000e+00 : f32
    %79 = vector.broadcast %cst_46 : f32 to vector<4x128xf32>
    %80 = arith.maximumf %78, %79 : vector<4x128xf32>
    %cst_47 = arith.constant dense<0.000000e+00> : vector<128xf32>
    %81 = vector.multi_reduction <add>, %80, %cst_47 [0] : vector<4x128xf32> to vector<128xf32>
    %82 = vector.shape_cast %81 : vector<128xf32> to vector<1x128xf32>
    %cst_48 = arith.constant 4.000000e+00 : f32
    %83 = vector.broadcast %cst_48 : f32 to vector<1x128xf32>
    %84 = arith.divf %82, %83 : vector<1x128xf32>
    %85 = vector.broadcast %84 : vector<1x128xf32> to vector<4x128xf32>
    %86 = arith.subf %80, %85 : vector<4x128xf32>
    %87 = vector.broadcast %84 : vector<1x128xf32> to vector<4x128xf32>
    %88 = arith.subf %80, %87 : vector<4x128xf32>
    %89 = arith.mulf %86, %88 : vector<4x128xf32>
    %cst_49 = arith.constant dense<0.000000e+00> : vector<128xf32>
    %90 = vector.multi_reduction <add>, %89, %cst_49 [0] : vector<4x128xf32> to vector<128xf32>
    %91 = vector.shape_cast %90 : vector<128xf32> to vector<1x128xf32>
    %cst_50 = arith.constant 4.000000e+00 : f32
    %92 = vector.broadcast %cst_50 : f32 to vector<1x128xf32>
    %93 = arith.divf %91, %92 : vector<1x128xf32>
    %94 = vector.broadcast %84 : vector<1x128xf32> to vector<4x128xf32>
    %95 = arith.subf %80, %94 : vector<4x128xf32>
    %cst_51 = arith.constant 9.99999974E-6 : f32
    %96 = vector.broadcast %cst_51 : f32 to vector<1x128xf32>
    %97 = arith.addf %93, %96 : vector<1x128xf32>
    %98 = math.rsqrt %97 : vector<1x128xf32>
    %99 = vector.broadcast %98 : vector<1x128xf32> to vector<4x128xf32>
    %100 = arith.mulf %95, %99 : vector<4x128xf32>
    %101 = vector.broadcast %74 : vector<1x128xf32> to vector<4x128xf32>
    %102 = arith.mulf %100, %101 : vector<4x128xf32>
    %103 = vector.broadcast %75 : vector<1x128xf32> to vector<4x128xf32>
    %104 = arith.addf %102, %103 : vector<4x128xf32>
    %c0_52 = arith.constant 0 : index
    %c0_53 = arith.constant 0 : index
    %105 = vector.load %arg15[%c0_52, %c0_53] : memref<128x128xf32, #tpu.memory_space<vmem>>, vector<128x128xf32>
    %c0_54 = arith.constant 0 : index
    %c0_55 = arith.constant 0 : index
    %106 = vector.load %arg16[%c0_54, %c0_55] : memref<1x128xf32, #tpu.memory_space<vmem>>, vector<1x128xf32>
    %c0_56 = arith.constant 0 : index
    %c0_57 = arith.constant 0 : index
    %107 = vector.load %arg17[%c0_56, %c0_57] : memref<1x128xf32, #tpu.memory_space<vmem>>, vector<1x128xf32>
    %c0_58 = arith.constant 0 : index
    %c0_59 = arith.constant 0 : index
    %108 = vector.load %arg18[%c0_58, %c0_59] : memref<1x128xf32, #tpu.memory_space<vmem>>, vector<1x128xf32>
    %cst_60 = arith.constant dense<0.000000e+00> : vector<4x128xf32>
    %109 = tpu.matmul %104, %105, %cst_60 {dimension_numbers = #tpu.dot_dimension_numbers<[1], [0], [0], [1], [0, 0, 1, 1], [], []>} : vector<4x128xf32>, vector<128x128xf32>, vector<4x128xf32> -> vector<4x128xf32>
    %110 = vector.broadcast %106 : vector<1x128xf32> to vector<4x128xf32>
    %111 = arith.addf %109, %110 : vector<4x128xf32>
    %cst_61 = arith.constant 0.000000e+00 : f32
    %112 = vector.broadcast %cst_61 : f32 to vector<4x128xf32>
    %113 = arith.maximumf %111, %112 : vector<4x128xf32>
    %cst_62 = arith.constant dense<0.000000e+00> : vector<128xf32>
    %114 = vector.multi_reduction <add>, %113, %cst_62 [0] : vector<4x128xf32> to vector<128xf32>
    %115 = vector.shape_cast %114 : vector<128xf32> to vector<1x128xf32>
    %cst_63 = arith.constant 4.000000e+00 : f32
    %116 = vector.broadcast %cst_63 : f32 to vector<1x128xf32>
    %117 = arith.divf %115, %116 : vector<1x128xf32>
    %118 = vector.broadcast %117 : vector<1x128xf32> to vector<4x128xf32>
    %119 = arith.subf %113, %118 : vector<4x128xf32>
    %120 = vector.broadcast %117 : vector<1x128xf32> to vector<4x128xf32>
    %121 = arith.subf %113, %120 : vector<4x128xf32>
    %122 = arith.mulf %119, %121 : vector<4x128xf32>
    %cst_64 = arith.constant dense<0.000000e+00> : vector<128xf32>
    %123 = vector.multi_reduction <add>, %122, %cst_64 [0] : vector<4x128xf32> to vector<128xf32>
    %124 = vector.shape_cast %123 : vector<128xf32> to vector<1x128xf32>
    %cst_65 = arith.constant 4.000000e+00 : f32
    %125 = vector.broadcast %cst_65 : f32 to vector<1x128xf32>
    %126 = arith.divf %124, %125 : vector<1x128xf32>
    %127 = vector.broadcast %117 : vector<1x128xf32> to vector<4x128xf32>
    %128 = arith.subf %113, %127 : vector<4x128xf32>
    %cst_66 = arith.constant 9.99999974E-6 : f32
    %129 = vector.broadcast %cst_66 : f32 to vector<1x128xf32>
    %130 = arith.addf %126, %129 : vector<1x128xf32>
    %131 = math.rsqrt %130 : vector<1x128xf32>
    %132 = vector.broadcast %131 : vector<1x128xf32> to vector<4x128xf32>
    %133 = arith.mulf %128, %132 : vector<4x128xf32>
    %134 = vector.broadcast %107 : vector<1x128xf32> to vector<4x128xf32>
    %135 = arith.mulf %133, %134 : vector<4x128xf32>
    %136 = vector.broadcast %108 : vector<1x128xf32> to vector<4x128xf32>
    %137 = arith.addf %135, %136 : vector<4x128xf32>
    %c0_67 = arith.constant 0 : index
    %c0_68 = arith.constant 0 : index
    %138 = vector.load %arg19[%c0_67, %c0_68] : memref<128x128xf32, #tpu.memory_space<vmem>>, vector<128x128xf32>
    %c0_69 = arith.constant 0 : index
    %c0_70 = arith.constant 0 : index
    %139 = vector.load %arg20[%c0_69, %c0_70] : memref<1x128xf32, #tpu.memory_space<vmem>>, vector<1x128xf32>
    %cst_71 = arith.constant dense<0.000000e+00> : vector<4x128xf32>
    %140 = tpu.matmul %137, %138, %cst_71 {dimension_numbers = #tpu.dot_dimension_numbers<[1], [0], [0], [1], [0, 0, 1, 1], [], []>} : vector<4x128xf32>, vector<128x128xf32>, vector<4x128xf32> -> vector<4x128xf32>
    %141 = vector.broadcast %139 : vector<1x128xf32> to vector<4x128xf32>
    %142 = arith.addf %140, %141 : vector<4x128xf32>
    %c0_72 = arith.constant 0 : index
    %c0_73 = arith.constant 0 : index
    %143 = vector.load %arg21[%c0_72, %c0_73] : memref<4x128xf32, #tpu.memory_space<vmem>>, vector<4x128xf32>
    tpu.vector_store %arg21[%c0_72, %c0_73], %142 {strides = array<i32>} : memref<4x128xf32, #tpu.memory_space<vmem>>, vector<4x128xf32>,
    return
  }
}

</mosaic_0001>

<bundles_post_ra>
// kernel: run_forward.1
= control target key start
LH: loop header
LB: loop body
LE: loop exit
PB: predicated region body
PF: predicated region fallthrough
CT: control target
= control target key end

     0   :  { %vm186_vm0 = vcmask 261120   ;;  %vm1556_vm1 = vmmov 0   ;;  %vm766_vm2 = vcmask 1043456   ;;  %s2036_s3 = inlined_call_operand.vmem [shape: f32[128,128], index: 3, kind: input, shape index: {}]   ;;  %s2037_s2 = inlined_call_operand.vmem [shape: f32[32,128], index: 2, kind: input, shape index: {}]   ;;  %s2038_s0 = inlined_call_operand.vmem [shape: f32[32,32], index: 0, kind: input, shape index: {}]   ;;  %s2039_s7 = inlined_call_operand.vmem [shape: f32[128,128], index: 7, kind: input, shape index: {}]   ;;  %s2040_s4 = inlined_call_operand.vmem [shape: f32[1,128], index: 4, kind: input, shape index: {}]   ;;  %s2041_s5 = inlined_call_operand.vmem [shape: f32[1,128], index: 5, kind: input, shape index: {}]   ;;  %s2042_s6 = inlined_call_operand.vmem [shape: f32[1,128], index: 6, kind: input, shape index: {}]   ;;  %s2043_s11 = inlined_call_operand.vmem [shape: f32[128,128], index: 11, kind: input, shape index: {}]   ;;  %s2044_s8 = inlined_call_operand.vmem [shape: f32[1,128], index: 8, kind: input, shape index: {}]   ;;  %s2045_s9 = inlined_call_operand.vmem [shape: f32[1,128], index: 9, kind: input, shape index: {}]   ;;  %s2046_s10 = inlined_call_operand.vmem [shape: f32[1,128], index: 10, kind: input, shape index: {}]   ;;  %s2047_s1 = inlined_call_operand.vmem [shape: f32[4,32], index: 1, kind: input, shape index: {}]   ;;  %s2048_s15 = inlined_call_operand.vmem [shape: f32[128,128], index: 15, kind: input, shape index: {}]   ;;  %s2049_s12 = inlined_call_operand.vmem [shape: f32[1,128], index: 12, kind: input, shape index: {}]   ;;  %s2050_s13 = inlined_call_operand.vmem [shape: f32[1,128], index: 13, kind: input, shape index: {}]   ;;  %s2051_s14 = inlined_call_operand.vmem [shape: f32[1,128], index: 14, kind: input, shape index: {}]   ;;  %s2052_s19 = inlined_call_operand.vmem [shape: f32[128,128], index: 19, kind: input, shape index: {}]   ;;  %s2053_s16 = inlined_call_operand.vmem [shape: f32[1,128], index: 16, kind: input, shape index: {}]   ;;  %s2054_s17 = inlined_call_operand.vmem [shape: f32[1,128], index: 17, kind: input, shape index: {}]   ;;  %s2055_s18 = inlined_call_operand.vmem [shape: f32[1,128], index: 18, kind: input, shape index: {}]   ;;  %s2056_s20 = inlined_call_operand.vmem [shape: f32[1,128], index: 20, kind: input, shape index: {}]   ;;  %s2057_s21 = inlined_call_operand.vmem [shape: f32[4,128], index: 21, kind: output, shape index: {}]  }
   0x1   :  { %2062 = sst [smem:[#allocation2_spill]] %s2036_s3 }
   0x2   :  { %2063 = sst [smem:[#allocation3_spill]] %s2037_s2  ;;  %s2068_s26 = sld [smem:[#allocation2_spill]] }
   0x3   :  { %2064 = sst [smem:[#allocation4_spill]] %s2038_s0  ;;  %s2069_s0 = sld [smem:[#allocation3_spill]] }
   0x4   :  { %2065 = sst [smem:[#allocation5_spill]] %s2039_s7  ;;  %s2070_s27 = sld [smem:[#allocation4_spill]] }
   0x5   :  { %2066 = sst [smem:[#allocation6_spill]] %s2040_s4  ;;  %s2071_s22 = sld [smem:[#allocation5_spill]] }
   0x6   :  { %2067 = sst [smem:[#allocation7_spill]] %s2041_s5  ;;  %s2072_s25 = sld [smem:[#allocation6_spill]] }
   0x7   :  { %s2073_s7 = sld [smem:[#allocation7_spill]] }
   0x8   :  { %v76_v0 = vld [vmem:[%s2068_s26] sm:$0xff]  ;;  %v77_v1 = vld [vmem:[%s2068_s26 + $0x8] sm:$0xff]  ;;  %v78_v2 = vld [vmem:[%s2068_s26 + $0x10] sm:$0xff] }
   0x9   :  { %v1386_v3 = vpack.c.bf16 %v77_v1, %v76_v0  ;;  %v79_v4 = vld [vmem:[%s2068_s26 + $0x18] sm:$0xff]  ;;  %v80_v6 = vld [vmem:[%s2068_s26 + $0x20] sm:$0xff]  ;;  %v81_v7 = vld [vmem:[%s2068_s26 + $0x28] sm:$0xff] }
   0xa   :  { %v1390_v5 = vpack.c.bf16 %v79_v4, %v78_v2  ;;  %v1394_v8 = vpack.c.bf16 %v81_v7, %v80_v6  ;;  %v72_v9 = vld [vmem:[%s2069_s0] sm:$0xff]  ;;  %v82_v10 = vld [vmem:[%s2068_s26 + $0x30] sm:$0xff]  ;;  %v83_v11 = vld [vmem:[%s2068_s26 + $0x38] sm:$0xff] }
   0xb   :  { %1387 = vmatprep.subr.bf16.mxu0 %v1386_v3  ;;  %1198 = vmatprep.mubr.f32.mxu0 %v72_v9  ;;  %v1398_v12 = vpack.c.bf16 %v83_v11, %v82_v10  ;;  %v84_v13 = vld [vmem:[%s2068_s26 + $0x40] sm:$0xff]  ;;  %v85_v14 = vld [vmem:[%s2068_s26 + $0x48] sm:$0xff]  ;;  %v86_v16 = vld [vmem:[%s2068_s26 + $0x50] sm:$0xff] }
   0xc   :  { %1389 = vmatpush3.bf16.msra.mxu0 %v1386_v3  ;;  %v1402_v15 = vpack.c.bf16 %v85_v14, %v84_v13  ;;  %v87_v17 = vld [vmem:[%s2068_s26 + $0x58] sm:$0xff]  ;;  %v88_v19 = vld [vmem:[%s2068_s26 + $0x60] sm:$0xff]  ;;  %v89_v20 = vld [vmem:[%s2068_s26 + $0x68] sm:$0xff] }
   0xd   :  { %1391 = vmatprep.subr.bf16.mxu0 %v1390_v5  ;;  %v1406_v18 = vpack.c.bf16 %v87_v17, %v86_v16  ;;  %v1410_v21 = vpack.c.bf16 %v89_v20, %v88_v19  ;;  %v90_v22 = vld [vmem:[%s2068_s26 + $0x70] sm:$0xff]  ;;  %v91_v23 = vld [vmem:[%s2068_s26 + $0x78] sm:$0xff]  ;;  %v73_v25 = vld [vmem:[%s2069_s0 + $0x8] sm:$0xff] }
   0xe   :  { %v1414_v24 = vpack.c.bf16 %v91_v23, %v90_v22  ;;  %v74_v26 = vld [vmem:[%s2069_s0 + $0x10] sm:$0xff]  ;;  %v75_v27 = vld [vmem:[%s2069_s0 + $0x18] sm:$0xff]  ;;  %v68_v28 = vld [vmem:[%s2070_s27] sm:$0xff] }
   0xf   :  { %v1735_v35 = vld [vmem:[%s2070_s27 + $0x8] sm:$0xff]  ;;  %v1740_v36 = vld [vmem:[%s2070_s27 + $0x10] sm:$0xff]  ;;  %v1749_v37 = vld [vmem:[%s2070_s27 + $0x18] sm:$0xff] }
  0x10   :  { %1393 = vmatpush3.bf16.msra.mxu0 %v1390_v5  ;;  %v343_v38 = vld [vmem:[%s2071_s22] sm:$0xff]  ;;  %v344_v39 = vld [vmem:[%s2071_s22 + $0x8] sm:$0xff]  ;;  %v345_v41 = vld [vmem:[%s2071_s22 + $0x10] sm:$0xff] }
  0x11   :  { %1395 = vmatprep.subr.bf16.mxu0 %v1394_v8  ;;  %v1426_v40 = vpack.c.bf16 %v344_v39, %v343_v38  ;;  %v346_v42 = vld [vmem:[%s2071_s22 + $0x18] sm:$0xff]  ;;  %v347_v44 = vld [vmem:[%s2071_s22 + $0x20] sm:$0xff]  ;;  %v348_v45 = vld [vmem:[%s2071_s22 + $0x28] sm:$0xff] }
  0x12   :  { %v1430_v43 = vpack.c.bf16 %v346_v42, %v345_v41  ;;  %v1434_v46 = vpack.c.bf16 %v348_v45, %v347_v44  ;;  %v349_v47 = vld [vmem:[%s2071_s22 + $0x30] sm:$0xff]  ;;  %v350_v48 = vld [vmem:[%s2071_s22 + $0x38] sm:$0xff]  ;;  %v351_v50 = vld [vmem:[%s2071_s22 + $0x40] sm:$0xff] }
  0x13   :  { %1427 = vmatprep.subr.bf16.mxu1 %v1426_v40  ;;  %v1438_v49 = vpack.c.bf16 %v350_v48, %v349_v47  ;;  %v352_v51 = vld [vmem:[%s2071_s22 + $0x48] sm:$0xff]  ;;  %v353_v53 = vld [vmem:[%s2071_s22 + $0x50] sm:$0xff]  ;;  %v354_v54 = vld [vmem:[%s2071_s22 + $0x58] sm:$0xff] }
  0x14   :  { %1397 = vmatpush3.bf16.msra.mxu0 %v1394_v8  ;;  %1429 = vmatpush3.bf16.msra.mxu1 %v1426_v40  ;;  %v1442_v52 = vpack.c.bf16 %v352_v51, %v351_v50  ;;  %v1446_v55 = vpack.c.bf16 %v354_v54, %v353_v53  ;;  %v355_v56 = vld [vmem:[%s2071_s22 + $0x60] sm:$0xff]  ;;  %v356_v57 = vld [vmem:[%s2071_s22 + $0x68] sm:$0xff]  ;;  %v357_v59 = vld [vmem:[%s2071_s22 + $0x70] sm:$0xff] }
  0x15   :  { %1399 = vmatprep.subr.bf16.mxu0 %v1398_v12  ;;  %1431 = vmatprep.subr.bf16.mxu1 %v1430_v43  ;;  %v1450_v58 = vpack.c.bf16 %v356_v57, %v355_v56  ;;  %v358_v60 = vld [vmem:[%s2071_s22 + $0x78] sm:$0xff]  ;;  %v1032_v62 = vld [vmem:[%s2072_s25] ss:$0 sm:$0xff] }
  0x16   :  { %v1454_v61 = vpack.c.bf16 %v358_v60, %v357_v59  ;;  %v1037_v44 = vld [vmem:[%s2073_s7] ss:$0 sm:$0xff] }
  0x18   :  { %1401 = vmatpush3.bf16.msra.mxu0 %v1398_v12  ;;  %1433 = vmatpush3.bf16.msra.mxu1 %v1430_v43 }
  0x19   :  { %1403 = vmatprep.subr.bf16.mxu0 %v1402_v15  ;;  %1435 = vmatprep.subr.bf16.mxu1 %v1434_v46 }
  0x1c   :  { %1405 = vmatpush3.bf16.msra.mxu0 %v1402_v15  ;;  %1437 = vmatpush3.bf16.msra.mxu1 %v1434_v46 }
  0x1d   :  { %1407 = vmatprep.subr.bf16.mxu0 %v1406_v18  ;;  %1439 = vmatprep.subr.bf16.mxu1 %v1438_v49 }
  0x20   :  { %1409 = vmatpush3.bf16.msra.mxu0 %v1406_v18  ;;  %1441 = vmatpush3.bf16.msra.mxu1 %v1438_v49  ;;  %v1038_v49 = vld [vmem:[%s2042_s6] ss:$0 sm:$0xff] }
  0x21   :  { %1411 = vmatprep.subr.bf16.mxu0 %v1410_v21  ;;  %1443 = vmatprep.subr.bf16.mxu1 %v1442_v52 }
  0x24   :  { %1413 = vmatpush3.bf16.msra.mxu0 %v1410_v21  ;;  %1445 = vmatpush3.bf16.msra.mxu1 %v1442_v52 }
  0x25   :  { %1415 = vmatprep.subr.bf16.mxu0 %v1414_v24  ;;  %1447 = vmatprep.subr.bf16.mxu1 %v1446_v55 }
  0x28   :  { %1417 = vmatpush3.bf16.msra.mxu0 %v1414_v24  ;;  %1449 = vmatpush3.bf16.msra.mxu1 %v1446_v55 }
  0x29   :  { %1451 = vmatprep.subr.bf16.mxu1 %v1450_v58 }
  0x2b   :  { %1199 = vmatmul.mubr.f32.vlgmr.msra.gmra.mrb[0].mxu0 %v73_v25 }
  0x2c   :  { %1201 = vmatprep.mubr.f32.mxu0 %v74_v26  ;;  %1453 = vmatpush3.bf16.msra.mxu1 %v1450_v58 }
  0x2d   :  { %1455 = vmatprep.subr.bf16.mxu1 %v1454_v61 }
  0x2f   :  { %1202 = vmatmul.mubr.f32.gmra.mrb[2].mxu0 %v75_v27 }
  0x30   :  { %1212 = vmatprep.mubr.msk.f32.mxu0 %vm186_vm0, %v68_v28  ;;  %1457 = vmatpush3.bf16.msra.mxu1 %v1454_v61 }
  0xfe   :  { %v1200_v29 = vpop.f32.mrb[0].mxu0 }
  0xff   :  { %v161_v30 = vpop.f32.mrb[1].mxu0 }
 0x100   :  { %v1418_v31 = vpack.c.bf16 %v1200_v29, %v161_v30 }
 0x102   :  { %v1203_v32 = vpop.f32.mrb[2].mxu0  ;;  %1419 = vmatprep.subr.bf16.mxu0 %v1418_v31 }
 0x103   :  { %v171_v33 = vpop.f32.mrb[3].mxu0  ;;  %1421 = vmatpush3.bf16.msra.mxu0 %v1418_v31 }
 0x104   :  { %v1422_v34 = vpack.c.bf16 %v1203_v32, %v171_v33 }
 0x106   :  { %1423 = vmatprep.subr.bf16.mxu0 %v1422_v34 }
 0x107   :  { %1425 = vmatpush3.bf16.msra.mxu0 %v1422_v34 }
 0x10a   :  { %1213 = vmatmul.mubr.msk.f32.vlgmr.msra.gmra.mrb[4].mxu0 %vm186_vm0, %v1735_v35 }
 0x10b   :  { %1215 = vmatprep.mubr.msk.f32.mxu0 %vm186_vm0, %v1740_v36 }
 0x10e   :  { %1216 = vmatmul.mubr.msk.f32.gmra.mrb[6].mxu0 %vm186_vm0, %v1749_v37 }
 0x10f   :  { %1264 = vmatprep.mubr.msk.f32.mxu0 %vm186_vm0, %v68_v28 }
 0x1dd   :  { %v1214_v63 = vpop.f32.mrb[4].mxu0 }
 0x1de   :  { %v271_v0 = vadd.f32 %v1214_v63, %v1032_v62  ;;  %v265_v1 = vpop.f32.mrb[5].mxu0 }
 0x1df   :  { %v266_v2 = vadd.f32 %v1032_v62, %v265_v1  ;;  %v1557_v1 = vmov 0.0  }
 0x1e0   :  { %v285_v3 = vmax.f32 %v271_v0, 0.0  ;;  %v1555_v0 = vmov 0.0|0.0  }
 0x1e1   :  { %v284_v4 = vmax.f32 %v266_v2, 0.0  ;;  %v1217_v5 = vpop.f32.mrb[6].mxu0  ;;  %1472 = vmatprep.subr.bf16.mxu1 %v1555_v0 }
 0x1e2   :  { %v275_v6 = vpop.f32.mrb[7].mxu0  ;;  %v281_v8 = vadd.f32 %v1217_v5, %v1032_v62  ;;  %v674_v5 = vld [vmem:[%s2043_s11 + $0x20] sm:$0xff] }
 0x1e3   :  { %v288_v7 = vadd.f32 %v285_v3, %v284_v4  ;;  %v276_v9 = vadd.f32 %v1032_v62, %v275_v6  ;;  %v675_v6 = vld [vmem:[%s2043_s11 + $0x28] sm:$0xff] }
 0x1e4   :  { %v287_v11 = vmax.f32 %v281_v8, 0.0  ;;  %v676_v8 = vld [vmem:[%s2043_s11 + $0x30] sm:$0xff] }
 0x1e5   :  { %v286_v10 = vmax.f32 %v276_v9, 0.0  ;;  %v677_v9 = vld [vmem:[%s2043_s11 + $0x38] sm:$0xff] }
 0x1e7   :  { %v289_v12 = vadd.f32 %v288_v7, %v286_v10  ;;  %v1479_v7 = vpack.c.bf16 %v675_v6, %v674_v5 }
 0x1e9   :  { %v290_v13 = vadd.f32 %v289_v12, %v287_v11  ;;  %v679_v12 = vld [vmem:[%s2043_s11 + $0x48] sm:$0xff] }
 0x1eb   :  { %v291_v14 = vrot.slane %v290_v13, 4 }
 0x1ed   :  { %v292_v15 = vadd.f32 %v291_v14, %v290_v13  ;;  %v680_v14 = vld [vmem:[%s2043_s11 + $0x50] sm:$0xff] }
 0x1ef   :  { %v293_v16 = vrot.slane %v292_v15, 2 }
 0x1f1   :  { %v294_v17 = vadd.f32 %v293_v16, %v292_v15  ;;  %v681_v15 = vld [vmem:[%s2043_s11 + $0x58] sm:$0xff] }
 0x1f2   :  { %v1488_v16 = vpack.c.bf16 %v681_v15, %v680_v14 }
 0x1f3   :  { %v295_v18 = vrot.slane %v294_v17, 1 }
 0x1f5   :  { %v296_v19 = vadd.f32 %v295_v18, %v294_v17  ;;  %v682_v17 = vld [vmem:[%s2043_s11 + $0x60] sm:$0xff]  ;;  %v683_v18 = vld [vmem:[%s2043_s11 + $0x68] sm:$0xff] }
 0x1f7   :  { %v298_v20 = vmul.f32 0.03125, %v296_v19  ;;  %v1491_v19 = vpack.c.bf16 %v683_v18, %v682_v17 }
 0x1f9   :  { %v299_v21 = vsub.f32 %v284_v4, %v298_v20  ;;  %v300_v22 = vsub.f32 %v285_v3, %v298_v20  ;;  %v301_v23 = vsub.f32 %v286_v10, %v298_v20  ;;  %v302_v24 = vsub.f32 %v287_v11, %v298_v20  ;;  %v673_v3 = vld [vmem:[%s2043_s11 + $0x18] sm:$0xff]  ;;  %v678_v11 = vld [vmem:[%s2043_s11 + $0x40] sm:$0xff]  ;;  %v684_v20 = vld [vmem:[%s2043_s11 + $0x70] sm:$0xff] }
 0x1fa   :  { %v1482_v10 = vpack.c.bf16 %v677_v9, %v676_v8  ;;  %v1485_v13 = vpack.c.bf16 %v679_v12, %v678_v11  ;;  %v1045_v9 = vld [vmem:[%s2046_s10] ss:$0 sm:$0xff] }
 0x1fb   :  { %v303_v25 = vmul.f32 %v299_v21, %v299_v21  ;;  %v304_v26 = vmul.f32 %v300_v22, %v300_v22  ;;  %v305_v27 = vmul.f32 %v301_v23, %v301_v23  ;;  %v306_v29 = vmul.f32 %v302_v24, %v302_v24 }
 0x1fd   :  { %v307_v28 = vadd.f32 %v304_v26, %v303_v25 }
 0x1ff   :  { %v308_v30 = vadd.f32 %v307_v28, %v305_v27 }
 0x201   :  { %v309_v31 = vadd.f32 %v308_v30, %v306_v29 }
 0x203   :  { %v310_v32 = vrot.slane %v309_v31, 4 }
 0x205   :  { %v311_v33 = vadd.f32 %v310_v32, %v309_v31 }
 0x207   :  { %v312_v34 = vrot.slane %v311_v33, 2 }
 0x209   :  { %v313_v38 = vadd.f32 %v312_v34, %v311_v33 }
 0x20b   :  { %v314_v39 = vrot.slane %v313_v38, 1 }
 0x20d   :  { %v315_v40 = vadd.f32 %v314_v39, %v313_v38 }
 0x20f   :  { %v316_v41 = vmul.f32 0.03125, %v315_v40 }
 0x211   :  { %v317_v42 = vadd.f32 1e-05, %v316_v41 }
 0x213   :  { %1547 = vrsqrt.f32 %v317_v42 }
 0x21d   :  { %v1548_v43 = vpop.eup %1547 }
 0x21e   :  { %v321_v45 = vmul.f32 %v1548_v43, %v301_v23  ;;  %v319_v46 = vmul.f32 %v1548_v43, %v299_v21  ;;  %v320_v47 = vmul.f32 %v1548_v43, %v300_v22  ;;  %v322_v48 = vmul.f32 %v1548_v43, %v302_v24  ;;  %v685_v21 = vld [vmem:[%s2043_s11 + $0x78] sm:$0xff]  ;;  %v1039_v23 = vld [vmem:[%s2044_s8] ss:$0 sm:$0xff] }
 0x21f   :  { %v1494_v22 = vpack.c.bf16 %v685_v21, %v684_v20  ;;  %v596_v20 = vld [vmem:[%s2047_s1] sm:$0xf] }
 0x220   :  { %v329_v50 = vmul.f32 %v1037_v44, %v319_v46  ;;  %v330_v51 = vmul.f32 %v1037_v44, %v320_v47  ;;  %v331_v52 = vmul.f32 %v1037_v44, %v321_v45  ;;  %v332_v55 = vmul.f32 %v1037_v44, %v322_v48 }
 0x222   :  { %v339_v53 = vadd.f32 %v1038_v49, %v329_v50  ;;  %v340_v54 = vadd.f32 %v1038_v49, %v330_v51  ;;  %v341_v56 = vadd.f32 %v1038_v49, %v331_v52  ;;  %v342_v57 = vadd.f32 %v1038_v49, %v332_v55 }
 0x224   :  { %1250 = vmatprep.mubr.f32.mxu1 %v339_v53 }
 0x225   :  { %1251 = vmatmul.mubr.f32.vlgmr.msra.gmra.mrb[0].mxu1 %v340_v54 }
 0x226   :  { %1253 = vmatprep.mubr.f32.mxu1 %v341_v56 }
 0x229   :  { %1254 = vmatmul.mubr.f32.gmra.mrb[2].mxu1 %v342_v57 }
 0x22a   :  { %1313 = vmatprep.mubr.msk.f32.mxu1 %vm1556_vm1, %v1557_v1 }
 0x2f8   :  { %v1252_v58 = vpop.f32.mrb[0].mxu1 }
 0x2f9   :  { %v428_v59 = vpop.f32.mrb[1].mxu1 }
 0x2fa   :  { %v1458_v60 = vpack.c.bf16 %v1252_v58, %v428_v59 }
 0x2fc   :  { %v1255_v61 = vpop.f32.mrb[2].mxu1  ;;  %1459 = vmatprep.subr.bf16.mxu0 %v1458_v60 }
 0x2fd   :  { %v438_v62 = vpop.f32.mrb[3].mxu1  ;;  %1461 = vmatpush3.bf16.msra.mxu0 %v1458_v60 }
 0x2fe   :  { %v1462_v63 = vpack.c.bf16 %v1255_v61, %v438_v62 }
 0x300   :  { %1463 = vmatprep.subr.bf16.mxu0 %v1462_v63 }
 0x301   :  { %1465 = vmatpush3.bf16.msra.mxu0 %v1462_v63 }
 0x302   :  { %1466 = vmatprep.subr.bf16.mxu0 %v1555_v0 }
 0x304   :  { %1265 = vmatmul.mubr.msk.f32.vlgmr.msra.gmra.mrb[8].mxu0 %vm186_vm0, %v1735_v35  ;;  %v670_v35 = vld [vmem:[%s2043_s11] sm:$0xff] }
 0x305   :  { %1267 = vmatprep.mubr.msk.f32.mxu0 %vm186_vm0, %v1740_v36  ;;  %v671_v36 = vld [vmem:[%s2043_s11 + $0x8] sm:$0xff] }
 0x306   :  { %v1473_v2 = vpack.c.bf16 %v671_v36, %v670_v35 }
 0x308   :  { %1268 = vmatmul.mubr.msk.f32.gmra.mrb[10].mxu0 %vm186_vm0, %v1749_v37  ;;  %v672_v37 = vld [vmem:[%s2043_s11 + $0x10] sm:$0xff]  ;;  %1474 = vmatpush3.bf16.msra.mxu1 %v1473_v2 }
 0x309   :  { %1278 = vmatprep.mubr.msk.f32.mxu0 %vm1556_vm1, %v1557_v1  ;;  %v1476_v4 = vpack.c.bf16 %v673_v3, %v672_v37  ;;  %1475 = vmatprep.subr.bf16.mxu1 %v1555_v0 }
 0x30c   :  { %1477 = vmatpush3.bf16.msra.mxu1 %v1476_v4  ;;  %v1044_v4 = vld [vmem:[%s2045_s9] ss:$0 sm:$0xff] }
 0x30d   :  { %1478 = vmatprep.subr.bf16.mxu1 %v1555_v0 }
 0x310   :  { %1480 = vmatpush3.bf16.msra.mxu1 %v1479_v7 }
 0x311   :  { %1481 = vmatprep.subr.bf16.mxu1 %v1555_v0 }
 0x314   :  { %1483 = vmatpush3.bf16.msra.mxu1 %v1482_v10 }
 0x315   :  { %1484 = vmatprep.subr.bf16.mxu1 %v1555_v0 }
 0x318   :  { %1486 = vmatpush3.bf16.msra.mxu1 %v1485_v13 }
 0x319   :  { %1487 = vmatprep.subr.bf16.mxu1 %v1555_v0 }
 0x31c   :  { %1489 = vmatpush3.bf16.msra.mxu1 %v1488_v16 }
 0x31d   :  { %1490 = vmatprep.subr.bf16.mxu1 %v1555_v0 }
 0x320   :  { %1492 = vmatpush3.bf16.msra.mxu1 %v1491_v19 }
 0x321   :  { %1493 = vmatprep.subr.bf16.mxu1 %v1555_v0 }
 0x324   :  { %1495 = vmatpush3.bf16.msra.mxu1 %v1494_v22 }
 0x325   :  { %1520 = vmatprep.subr.bf16.mxu1 %v1555_v0 }
 0x3d7   :  { %v1266_v24 = vpop.f32.mrb[8].mxu0 }
 0x3d8   :  { %v525_v25 = vadd.f32 %v1266_v24, %v1039_v23  ;;  %v519_v26 = vpop.f32.mrb[9].mxu0  ;;  %v804_v24 = vld [vmem:[%s2048_s15 + $0x8] sm:$0xff] }
 0x3d9   :  { %v520_v27 = vadd.f32 %v1039_v23, %v519_v26  ;;  %v805_v26 = vld [vmem:[%s2048_s15 + $0x10] sm:$0xff] }
 0x3da   :  { %v539_v28 = vmax.f32 %v525_v25, 0.0 }
 0x3db   :  { %v538_v29 = vmax.f32 %v520_v27, 0.0  ;;  %v1269_v30 = vpop.f32.mrb[10].mxu0 }
 0x3dc   :  { %v529_v31 = vpop.f32.mrb[11].mxu0  ;;  %v535_v33 = vadd.f32 %v1269_v30, %v1039_v23 }
 0x3dd   :  { %v542_v32 = vadd.f32 %v539_v28, %v538_v29  ;;  %v530_v34 = vadd.f32 %v1039_v23, %v529_v31  ;;  %v803_v23 = vld [vmem:[%s2048_s15] sm:$0xff]  ;;  %v809_v31 = vld [vmem:[%s2048_s15 + $0x30] sm:$0xff] }
 0x3de   :  { %v541_v39 = vmax.f32 %v535_v33, 0.0  ;;  %v1497_v25 = vpack.c.bf16 %v804_v24, %v803_v23  ;;  %v940_v23 = vld [vmem:[%s2052_s19 + $0x30] sm:$0xff]  ;;  %v941_v24 = vld [vmem:[%s2052_s19 + $0x38] sm:$0xff] }
 0x3df   :  { %v540_v38 = vmax.f32 %v530_v34, 0.0  ;;  %v811_v34 = vld [vmem:[%s2048_s15 + $0x40] sm:$0xff] }
 0x3e1   :  { %v543_v40 = vadd.f32 %v542_v32, %v540_v38  ;;  %v810_v32 = vld [vmem:[%s2048_s15 + $0x38] sm:$0xff] }
 0x3e2   :  { %v1506_v33 = vpack.c.bf16 %v810_v32, %v809_v31  ;;  %v946_v31 = vld [vmem:[%s2052_s19 + $0x60] sm:$0xff]  ;;  %v947_v32 = vld [vmem:[%s2052_s19 + $0x68] sm:$0xff] }
 0x3e3   :  { %v544_v41 = vadd.f32 %v543_v40, %v541_v39  ;;  %v813_v40 = vld [vmem:[%s2048_s15 + $0x50] sm:$0xff] }
 0x3e5   :  { %v545_v42 = vrot.slane %v544_v41, 4 }
 0x3e7   :  { %v546_v43 = vadd.f32 %v545_v42, %v544_v41  ;;  %v814_v41 = vld [vmem:[%s2048_s15 + $0x58] sm:$0xff] }
 0x3e8   :  { %v1512_v42 = vpack.c.bf16 %v814_v41, %v813_v40  ;;  %v1050_v40 = vld [vmem:[%s2053_s16] ss:$0 sm:$0xff] }
 0x3e9   :  { %v547_v44 = vrot.slane %v546_v43, 2 }
 0x3eb   :  { %v548_v45 = vadd.f32 %v547_v44, %v546_v43  ;;  %v815_v43 = vld [vmem:[%s2048_s15 + $0x60] sm:$0xff]  ;;  %v816_v44 = vld [vmem:[%s2048_s15 + $0x68] sm:$0xff] }
 0x3ed   :  { %v549_v46 = vrot.slane %v548_v45, 1 }
 0x3ef   :  { %v550_v47 = vadd.f32 %v549_v46, %v548_v45  ;;  %v1515_v45 = vpack.c.bf16 %v816_v44, %v815_v43  ;;  %v817_v46 = vld [vmem:[%s2048_s15 + $0x70] sm:$0xff] }
 0x3f1   :  { %v551_v48 = vmul.f32 0.03125, %v550_v47  ;;  %v818_v47 = vld [vmem:[%s2048_s15 + $0x78] sm:$0xff] }
 0x3f3   :  { %v552_v49 = vsub.f32 %v538_v29, %v551_v48  ;;  %v553_v50 = vsub.f32 %v539_v28, %v551_v48  ;;  %v554_v51 = vsub.f32 %v540_v38, %v551_v48  ;;  %v555_v52 = vsub.f32 %v541_v39, %v551_v48  ;;  %v807_v28 = vld [vmem:[%s2048_s15 + $0x20] sm:$0xff]  ;;  %v808_v29 = vld [vmem:[%s2048_s15 + $0x28] sm:$0xff] }
 0x3f4   :  { %v1503_v30 = vpack.c.bf16 %v808_v29, %v807_v28  ;;  %v812_v38 = vld [vmem:[%s2048_s15 + $0x48] sm:$0xff]  ;;  %v1518_v48 = vpack.c.bf16 %v818_v47, %v817_v46  ;;  %v944_v28 = vld [vmem:[%s2052_s19 + $0x50] sm:$0xff]  ;;  %v945_v29 = vld [vmem:[%s2052_s19 + $0x58] sm:$0xff] }
 0x3f5   :  { %v556_v53 = vmul.f32 %v552_v49, %v552_v49  ;;  %v557_v54 = vmul.f32 %v553_v50, %v553_v50  ;;  %v558_v55 = vmul.f32 %v554_v51, %v554_v51  ;;  %v559_v57 = vmul.f32 %v555_v52, %v555_v52 }
 0x3f6   :  { %v1509_v39 = vpack.c.bf16 %v812_v38, %v811_v34  ;;  %v948_v34 = vld [vmem:[%s2052_s19 + $0x70] sm:$0xff]  ;;  %v949_v38 = vld [vmem:[%s2052_s19 + $0x78] sm:$0xff] }
 0x3f7   :  { %v560_v56 = vadd.f32 %v557_v54, %v556_v53 }
 0x3f9   :  { %v561_v58 = vadd.f32 %v560_v56, %v558_v55 }
 0x3fb   :  { %v562_v59 = vadd.f32 %v561_v58, %v559_v57 }
 0x3fd   :  { %v563_v60 = vrot.slane %v562_v59, 4 }
 0x3ff   :  { %v564_v61 = vadd.f32 %v563_v60, %v562_v59 }
 0x401   :  { %v565_v62 = vrot.slane %v564_v61, 2 }
 0x403   :  { %v566_v63 = vadd.f32 %v565_v62, %v564_v61 }
 0x405   :  { %v567_v35 = vrot.slane %v566_v63, 1 }
 0x407   :  { %v568_v36 = vadd.f32 %v567_v35, %v566_v63 }
 0x409   :  { %v569_v37 = vmul.f32 0.03125, %v568_v36 }
 0x40b   :  { %v570_v2 = vadd.f32 1e-05, %v569_v37 }
 0x40d   :  { %1549 = vrsqrt.f32 %v570_v2 }
 0x417   :  { %v1550_v3 = vpop.eup %1549 }
 0x418   :  { %v574_v5 = vmul.f32 %v1550_v3, %v554_v51  ;;  %v572_v6 = vmul.f32 %v1550_v3, %v552_v49  ;;  %v573_v7 = vmul.f32 %v1550_v3, %v553_v50  ;;  %v575_v8 = vmul.f32 %v1550_v3, %v555_v52  ;;  %v1047_v49 = vld [vmem:[%s2049_s12] ss:$0 sm:$0xff] }
 0x41a   :  { %v584_v10 = vmul.f32 %v1044_v4, %v574_v5  ;;  %v582_v11 = vmul.f32 %v1044_v4, %v572_v6  ;;  %v583_v12 = vmul.f32 %v1044_v4, %v573_v7  ;;  %v585_v13 = vmul.f32 %v1044_v4, %v575_v8 }
 0x41c   :  { %v594_v14 = vadd.f32 %v1045_v9, %v584_v10  ;;  %v592_v15 = vadd.f32 %v1045_v9, %v582_v11  ;;  %v593_v16 = vadd.f32 %v1045_v9, %v583_v12  ;;  %v595_v17 = vadd.f32 %v1045_v9, %v585_v13  ;;  %v1048_v9 = vld [vmem:[%s2050_s13] ss:$0 sm:$0xff] }
 0x41d   :  { %v1049_v11 = vld [vmem:[%s2051_s14] ss:$0 sm:$0xff] }
 0x41e   :  { %v1467_v18 = vpack.c.bf16 %v593_v16, %v592_v15  ;;  %v1470_v19 = vpack.c.bf16 %v595_v17, %v594_v14  ;;  %v934_v14 = vld [vmem:[%s2052_s19] sm:$0xff]  ;;  %v935_v15 = vld [vmem:[%s2052_s19 + $0x8] sm:$0xff]  ;;  %v936_v17 = vld [vmem:[%s2052_s19 + $0x10] sm:$0xff] }
 0x41f   :  { %v1521_v16 = vpack.c.bf16 %v935_v15, %v934_v14 }
 0x420   :  { %1468 = vmatpush3.bf16.msra.mxu0 %v1467_v18  ;;  %v937_v18 = vld [vmem:[%s2052_s19 + $0x18] sm:$0xff] }
 0x421   :  { %1469 = vmatprep.subr.bf16.mxu0 %v1555_v0 }
 0x424   :  { %1471 = vmatpush3.bf16.msra.mxu0 %v1470_v19  ;;  %v1524_v19 = vpack.c.bf16 %v937_v18, %v936_v17 }
 0x425   :  { %1496 = vmatprep.subr.bf16.mxu0 %v1555_v0 }
 0x427   :  { %1279 = vmatmul.mubr.msk.f32.vlgmr.msra.gmra.mrb[12].mxu0 %vm186_vm0, %v596_v20  ;;  %v938_v20 = vld [vmem:[%s2052_s19 + $0x20] sm:$0xff] }
 0x428   :  { %1348 = vmatprep.mubr.msk.f32.mxu0 %vm1556_vm1, %v1557_v1  ;;  %1498 = vmatpush3.bf16.msra.mxu0 %v1497_v25  ;;  %v1530_v25 = vpack.c.bf16 %v941_v24, %v940_v23 }
 0x429   :  { %1499 = vmatprep.subr.bf16.mxu0 %v1555_v0 }
 0x4fa   :  { %v666_v21 = vpop.f32.mrb[12].mxu0 }
 0x4fb   :  { %v1280_v22 = vpop.f32.mrb[13].mxu0  ;;  %1314 = vmatmul.mubr.f32.vlgmr.msra.gmra.mrb[4].mxu1 %v666_v21  ;;  %v939_v21 = vld [vmem:[%s2052_s19 + $0x28] sm:$0xff] }
 0x4fc   :  { %1383 = vmatprep.mubr.msk.f32.mxu1 %vm1556_vm1, %v1557_v1  ;;  %v806_v1 = vld [vmem:[%s2048_s15 + $0x18] sm:$0xff]  ;;  %1522 = vmatpush3.bf16.msra.mxu1 %v1521_v16  ;;  %v1527_v22 = vpack.c.bf16 %v939_v21, %v938_v20 }
 0x4fd   :  { %v1500_v27 = vpack.c.bf16 %v806_v1, %v805_v26  ;;  %1523 = vmatprep.subr.bf16.mxu1 %v1555_v0  ;;  %v942_v26 = vld [vmem:[%s2052_s19 + $0x40] sm:$0xff]  ;;  %v943_v1 = vld [vmem:[%s2052_s19 + $0x48] sm:$0xff] }
 0x4ff   :  { %1501 = vmatpush3.bf16.msra.mxu0 %v1500_v27  ;;  %v1533_v27 = vpack.c.bf16 %v943_v1, %v942_v26 }
 0x500   :  { %1502 = vmatprep.subr.bf16.mxu0 %v1555_v0  ;;  %1525 = vmatpush3.bf16.msra.mxu1 %v1524_v19 }
 0x501   :  { %1526 = vmatprep.subr.bf16.mxu1 %v1555_v0 }
 0x503   :  { %1504 = vmatpush3.bf16.msra.mxu0 %v1503_v30  ;;  %v1536_v30 = vpack.c.bf16 %v945_v29, %v944_v28 }
 0x504   :  { %1505 = vmatprep.subr.bf16.mxu0 %v1555_v0  ;;  %1528 = vmatpush3.bf16.msra.mxu1 %v1527_v22 }
 0x505   :  { %1529 = vmatprep.subr.bf16.mxu1 %v1555_v0 }
 0x507   :  { %1507 = vmatpush3.bf16.msra.mxu0 %v1506_v33  ;;  %v1539_v33 = vpack.c.bf16 %v947_v32, %v946_v31 }
 0x508   :  { %1508 = vmatprep.subr.bf16.mxu0 %v1555_v0  ;;  %1531 = vmatpush3.bf16.msra.mxu1 %v1530_v25 }
 0x509   :  { %1532 = vmatprep.subr.bf16.mxu1 %v1555_v0 }
 0x50b   :  { %1510 = vmatpush3.bf16.msra.mxu0 %v1509_v39  ;;  %v1542_v39 = vpack.c.bf16 %v949_v38, %v948_v34 }
 0x50c   :  { %1511 = vmatprep.subr.bf16.mxu0 %v1555_v0  ;;  %1534 = vmatpush3.bf16.msra.mxu1 %v1533_v27 }
 0x50d   :  { %1535 = vmatprep.subr.bf16.mxu1 %v1555_v0 }
 0x50f   :  { %1513 = vmatpush3.bf16.msra.mxu0 %v1512_v42 }
 0x510   :  { %1514 = vmatprep.subr.bf16.mxu0 %v1555_v0  ;;  %1537 = vmatpush3.bf16.msra.mxu1 %v1536_v30 }
 0x511   :  { %1538 = vmatprep.subr.bf16.mxu1 %v1555_v0 }
 0x513   :  { %1516 = vmatpush3.bf16.msra.mxu0 %v1515_v45 }
 0x514   :  { %1517 = vmatprep.subr.bf16.mxu0 %v1555_v0  ;;  %1540 = vmatpush3.bf16.msra.mxu1 %v1539_v33 }
 0x515   :  { %1541 = vmatprep.subr.bf16.mxu1 %v1555_v0 }
 0x517   :  { %1519 = vmatpush3.bf16.msra.mxu0 %v1518_v48 }
 0x518   :  { %1543 = vmatpush3.bf16.msra.mxu1 %v1542_v39 }
 0x5ce   :  { %v761_v50 = vpop.f32.mrb[4].mxu1 }
 0x5cf   :  { %v762_v51 = vadd.f32 %v1047_v49, %v761_v50  ;;  %v1315_v52 = vpop.f32.mrb[5].mxu1 }
 0x5d1   :  { %v765_v53 = vmax.f32 %v762_v51, 0.0 }
 0x5d3   :  { %v767_v54 = vsel %vm766_vm2, %v765_v53, 0.0 }
 0x5d4   :  { %v768_v55 = vrot.slane %v767_v54, 4 }
 0x5d6   :  { %v769_v56 = vadd.f32 %v768_v55, %v767_v54 }
 0x5d8   :  { %v770_v57 = vrot.slane %v769_v56, 2 }
 0x5da   :  { %v771_v58 = vadd.f32 %v770_v57, %v769_v56 }
 0x5dc   :  { %v772_v59 = vrot.slane %v771_v58, 1 }
 0x5de   :  { %v773_v60 = vadd.f32 %v772_v59, %v771_v58 }
 0x5e0   :  { %v775_v61 = vmul.f32 0.25, %v773_v60 }
 0x5e2   :  { %v776_v62 = vsub.f32 %v765_v53, %v775_v61 }
 0x5e4   :  { %v777_v63 = vmul.f32 %v776_v62, %v776_v62 }
 0x5e6   :  { %v778_v35 = vsel %vm766_vm2, %v777_v63, 0.0 }
 0x5e7   :  { %v779_v36 = vrot.slane %v778_v35, 4 }
 0x5e9   :  { %v780_v37 = vadd.f32 %v779_v36, %v778_v35  ;;  %v1051_v35 = vld [vmem:[%s2054_s17] ss:$0 sm:$0xff] }
 0x5eb   :  { %v781_v2 = vrot.slane %v780_v37, 2 }
 0x5ed   :  { %v782_v3 = vadd.f32 %v781_v2, %v780_v37  ;;  %v1052_v37 = vld [vmem:[%s2055_s18] ss:$0 sm:$0xff] }
 0x5ef   :  { %v783_v4 = vrot.slane %v782_v3, 1 }
 0x5f1   :  { %v784_v5 = vadd.f32 %v783_v4, %v782_v3  ;;  %v1053_v4 = vld [vmem:[%s2056_s20] ss:$0 sm:$0xff] }
 0x5f3   :  { %v785_v6 = vmul.f32 0.25, %v784_v5 }
 0x5f5   :  { %v786_v7 = vadd.f32 1e-05, %v785_v6 }
 0x5f7   :  { %1551 = vrsqrt.f32 %v786_v7 }
 0x601   :  { %v1552_v8 = vpop.eup %1551 }
 0x602   :  { %v788_v10 = vmul.f32 %v1552_v8, %v776_v62 }
 0x604   :  { %v795_v12 = vmul.f32 %v1048_v9, %v788_v10 }
 0x606   :  { %v802_v13 = vadd.f32 %v1049_v11, %v795_v12 }
 0x608   :  { %1349 = vmatmul.mubr.f32.vlgmr.msra.gmra.mrb[14].mxu0 %v802_v13 }
 0x6db   :  { %v894_v41 = vpop.f32.mrb[14].mxu0 }
 0x6dc   :  { %v895_v42 = vadd.f32 %v1050_v40, %v894_v41  ;;  %v1350_v43 = vpop.f32.mrb[15].mxu0 }
 0x6de   :  { %v898_v44 = vmax.f32 %v895_v42, 0.0 }
 0x6e0   :  { %v899_v0 = vsel %vm766_vm2, %v898_v44, 0.0 }
 0x6e1   :  { %v900_v45 = vrot.slane %v899_v0, 4 }
 0x6e3   :  { %v901_v46 = vadd.f32 %v900_v45, %v899_v0 }
 0x6e5   :  { %v902_v47 = vrot.slane %v901_v46, 2 }
 0x6e7   :  { %v903_v48 = vadd.f32 %v902_v47, %v901_v46 }
 0x6e9   :  { %v904_v49 = vrot.slane %v903_v48, 1 }
 0x6eb   :  { %v905_v50 = vadd.f32 %v904_v49, %v903_v48 }
 0x6ed   :  { %v906_v51 = vmul.f32 0.25, %v905_v50 }
 0x6ef   :  { %v907_v52 = vsub.f32 %v898_v44, %v906_v51 }
 0x6f1   :  { %v908_v53 = vmul.f32 %v907_v52, %v907_v52 }
 0x6f3   :  { %v909_v54 = vsel %vm766_vm2, %v908_v53, 0.0 }
 0x6f4   :  { %v910_v55 = vrot.slane %v909_v54, 4 }
 0x6f6   :  { %v911_v56 = vadd.f32 %v910_v55, %v909_v54 }
 0x6f8   :  { %v912_v57 = vrot.slane %v911_v56, 2 }
 0x6fa   :  { %v913_v58 = vadd.f32 %v912_v57, %v911_v56 }
 0x6fc   :  { %v914_v59 = vrot.slane %v913_v58, 1 }
 0x6fe   :  { %v915_v60 = vadd.f32 %v914_v59, %v913_v58 }
 0x700   :  { %v916_v61 = vmul.f32 0.25, %v915_v60 }
 0x702   :  { %v917_v62 = vadd.f32 1e-05, %v916_v61 }
 0x704   :  { %1553 = vrsqrt.f32 %v917_v62 }
 0x70e   :  { %v1554_v63 = vpop.eup %1553 }
 0x70f   :  { %v919_v36 = vmul.f32 %v1554_v63, %v907_v52 }
 0x711   :  { %v926_v2 = vmul.f32 %v1051_v35, %v919_v36 }
 0x713   :  { %v933_v3 = vadd.f32 %v1052_v37, %v926_v2 }
 0x715   :  { %1384 = vmatmul.mubr.f32.vlgmr.msra.gmra.mrb[6].mxu1 %v933_v3 }
 0x7e8   :  { %v1023_v5 = vpop.f32.mrb[6].mxu1 }
 0x7e9   :  { %v1024_v6 = vadd.f32 %v1053_v4, %v1023_v5  ;;  %v1385_v7 = vpop.f32.mrb[7].mxu1 }
 0x7eb   :  { %1027 = vst [vmem:[%s2057_s21] sm:$0xf] %v1024_v6 }

</bundles_post_ra>
